<compile_context>
chip_gen: v7x
topology: tpu7x:2x2x1
jax: 0.10.0
libtpu: 0.0.40
codegen_flags: <defaults>
</compile_context>

<pallas_src>
import jax
import jax.numpy as jnp
from jax.experimental import pallas as pl
from jax.experimental.pallas import tpu as pltpu


def _round_up(n, m):
    return ((n + m - 1) // m) * m


# ----------------------------------------------------------------------------
# Fused kernel: conv3x3 (Toeplitz matmul) + bias + ReLU + GAP + folded head
# ----------------------------------------------------------------------------
def _fused_forward_kernel(xflat_ref, w_ref, b_ref, wh_ref, bh_ref, out_ref):
    # xflat_ref: (NB, Hp, WC)      halo-padded rows, lanes = (w, cin) padded to WC
    # w_ref:     (3*WC, WCP)       block-Toeplitz conv weights, cols = (w, cout)
    # b_ref:     (1, WCP)          conv bias tiled over w (f32)
    # wh_ref:    (WCP, KP)         folded head: (w-sum, 1/HW, fc, unsup_fc)
    # bh_ref:    (1, KP)           folded head bias
    # out_ref:   (1, NB, KP)       logits for this batch block
    NB, Hp, WC = xflat_ref.shape
    H = Hp - 2

    # 3 row slabs (one per ky tap). Each slice is along the sublane dim, the
    # reshape only merges leading (batch, h) dims, and the concat is at full
    # 128-lane tile boundaries -> no lane-sparse relayouts.
    rows = [xflat_ref[:, ky:ky + H, :].reshape(NB * H, WC) for ky in range(3)]
    lhs = jnp.concatenate(rows, axis=-1)                       # (NB*H, 3*WC)

    # conv3x3 as ONE Toeplitz matmul: rows = (n, h), lanes = (w, cout).
    y = jnp.dot(lhs.astype(w_ref.dtype), w_ref[...],
                preferred_element_type=jnp.float32)            # (NB*H, WCP)
    y = jnp.maximum(y + b_ref[...], 0.0)                       # bias + ReLU (f32)

    # GAP step 1: sum over h (cross-sublane / XLU reduce). The sum over w and
    # the 1/(H*W) scale are folded into wh_ref in the wrapper.
    s = y.reshape(NB, H, y.shape[-1]).sum(axis=1)              # (NB, WCP)

    # Folded head: GAP(w) ∘ fc ∘ unsup_fc in one matmul (f32 accumulation).
    out_ref[0] = jnp.dot(s.astype(wh_ref.dtype), wh_ref[...],
                         preferred_element_type=jnp.float32) + bh_ref[...]


# ----------------------------------------------------------------------------
# One-time weight preprocessing (fold / Toeplitz / pad / cast) -- hoisted out
# of the per-call wrapper so it is not re-executed every forward.
# ----------------------------------------------------------------------------
def prepare_unsuper_params(params, H, W, *, mxu_dtype=jnp.bfloat16):
    conv_w = params["conv_w"]                       # (3, 3, Cin, Cout)
    conv_b = params["conv_b"].reshape(-1)           # (Cout,)
    fc_w = params["fc_w"]                           # (Cout, 512)
    fc_b = params["fc_b"].reshape(1, -1)            # (1, 512)
    unsup_w = params["unsup_w"]                     # (512, K)
    unsup_b = params["unsup_b"].reshape(1, -1)      # (1, K)

    _, _, Cin, Cout = conv_w.shape
    K = unsup_w.shape[1]
    Hp, Wp = H + 2, W + 2
    WC = _round_up(Wp * Cin, 128)                   # lane-padded (w, cin) width
    WCout = W * Cout
    WCP = _round_up(WCout, 128)                     # lane-dense conv-out width
    KP = _round_up(K, 128)                          # lane-dense logits

    # Block-Toeplitz conv weights:
    #   rhs[ky*WC + wp*Cin + cin, w*Cout + cout] = conv_w[ky, wp-w, cin, cout]
    #   if 0 <= wp-w < 3 else 0.
    wp_idx = jnp.arange(Wp)[:, None]
    w_idx = jnp.arange(W)[None, :]
    kx = wp_idx - w_idx                                            # (Wp, W)
    valid = (kx >= 0) & (kx < 3)
    gathered = conv_w[:, jnp.clip(kx, 0, 2), :, :]                 # (3,Wp,W,Cin,Cout)
    gathered = jnp.where(valid[None, :, :, None, None], gathered, 0.0)
    w_toep = jnp.transpose(gathered, (0, 1, 3, 2, 4))              # (3,Wp,Cin,W,Cout)
    w_toep = w_toep.reshape(3, Wp * Cin, WCout)
    w_toep = jnp.pad(w_toep, ((0, 0), (0, WC - Wp * Cin), (0, WCP - WCout)))
    w_toep = w_toep.reshape(3 * WC, WCP).astype(mxu_dtype)

    # Conv bias tiled over w so it broadcasts over the (w, cout) lane layout.
    b_tiled = jnp.pad(jnp.tile(conv_b[None, :], (1, W)),
                      ((0, 0), (0, WCP - WCout))).astype(jnp.float32)

    # Fold fc -> unsup_fc (exact: linear∘linear) and the GAP w-sum + 1/HW.
    w_head = (fc_w @ unsup_w) / float(H * W)                       # (Cout, K)
    b_head = fc_b @ unsup_w + unsup_b                              # (1, K)
    wh_tiled = jnp.pad(jnp.tile(w_head, (W, 1)),                   # (W*Cout, K)
                       ((0, WCP - WCout), (0, KP - K))).astype(mxu_dtype)
    bh = jnp.pad(b_head, ((0, 0), (0, KP - K))).astype(jnp.float32)

    weights = {"w_toep": w_toep, "b_tiled": b_tiled,
               "wh_tiled": wh_tiled, "bh": bh}
    return weights, K


def _pick_block_n(N, H, Hp, WC, WCP, itemsize=4,
                  budget_bytes=20 * 1024 * 1024):
    # >= 2 grid steps so v7x's 2 TensorCores both work ("parallel" axis), and
    # >= 4 when possible so BlockSpec pipelining hides the input DMA; cap the
    # per-step live data to a v7x-safe (~64 MiB physical VMEM) budget.
    target_steps = min(4, N) if N >= 4 else N
    best = 1
    for d in range(1, N + 1):
        if N % d:
            continue
        live = (2 * d * Hp * WC          # double-buffered input tile
                + 3 * d * H * WC         # concatenated lhs
                + d * H * WCP            # conv output
                + 2 * d * WCP) * itemsize
        if (N // d) >= target_steps and live <= budget_bytes:
            best = d
    return best


# ----------------------------------------------------------------------------
# Forward wrapper: layout glue + one pallas_call
# ----------------------------------------------------------------------------
def unsuper_model_forward(x_nchw, weights, *, n_classes, block_n=None):
    N, Cin, H, W = x_nchw.shape
    Hp, Wp = H + 2, W + 2
    w_toep, b_tiled = weights["w_toep"], weights["b_tiled"]
    wh_tiled, bh = weights["wh_tiled"], weights["bh"]
    WC = w_toep.shape[0] // 3
    WCP = w_toep.shape[1]
    KP = wh_tiled.shape[1]

    # Glue: NCHW -> NHWC, 1px zero halo, flatten (Wp, Cin) onto lanes and pad
    # to a full 128-lane tile so every in-kernel slice/concat is lane-aligned.
    x_nhwc = jnp.transpose(x_nchw, (0, 2, 3, 1))
    xflat = jnp.pad(x_nhwc, ((0, 0), (1, 1), (1, 1), (0, 0)))
    xflat = xflat.reshape(N, Hp, Wp * Cin)
    xflat = jnp.pad(xflat, ((0, 0), (0, 0), (0, WC - Wp * Cin)))

    NB = _pick_block_n(N, H, Hp, WC, WCP) if block_n is None else block_n
    assert N % NB == 0, "batch must be divisible by block_n"
    steps = N // NB

    flops = 2 * N * H * (3 * WC) * WCP + 2 * N * WCP * KP
    bytes_accessed = (xflat.size * xflat.dtype.itemsize
                      + sum(v.size * v.dtype.itemsize for v in weights.values())
                      + N * KP * 4)

    out3 = pl.pallas_call(
        _fused_forward_kernel,
        out_shape=jax.ShapeDtypeStruct((steps, NB, KP), jnp.float32),
        grid=(steps,),
        in_specs=[
            pl.BlockSpec((NB, Hp, WC), lambda n: (n, 0, 0)),
            pl.BlockSpec((3 * WC, WCP), lambda n: (0, 0)),
            pl.BlockSpec((1, WCP), lambda n: (0, 0)),
            pl.BlockSpec((WCP, KP), lambda n: (0, 0)),
            pl.BlockSpec((1, KP), lambda n: (0, 0)),
        ],
        out_specs=pl.BlockSpec((1, NB, KP), lambda n: (n, 0, 0)),
        compiler_params=pltpu.CompilerParams(
            dimension_semantics=("parallel",),     # megacore-shards batch on v7x
            vmem_limit_bytes=48 * 1024 * 1024),    # >32MiB default, <64MiB v7x phys
        cost_estimate=pl.CostEstimate(flops=int(flops), transcendentals=0,
                                      bytes_accessed=int(bytes_accessed)),
    )(xflat, w_toep, b_tiled, wh_tiled, bh)

    return out3.reshape(N, KP)[:, :n_classes]


# ----------------------------------------------------------------------------
# Pure-JAX reference (unfolded, unpadded) for validation.
# ----------------------------------------------------------------------------
def reference_forward(x_nchw, params):
    x_nhwc = jnp.transpose(x_nchw, (0, 2, 3, 1))
    y = jax.lax.conv_general_dilated(
        x_nhwc, params["conv_w"], window_strides=(1, 1), padding="SAME",
        dimension_numbers=("NHWC", "HWIO", "NHWC"))
    y = jnp.maximum(y + params["conv_b"][0], 0.0)
    feats = jnp.mean(y, axis=(1, 2))
    h = feats @ params["fc_w"] + params["fc_b"][0]
    return h @ params["unsup_w"] + params["unsup_b"][0]


if __name__ == "__main__":
    # Small shapes: batch=2, channels=4, spatial=16x16, backbone feat=32,
    # fc_out=512, n_unsup_classes=10.
    N, Cin, H, W = 2, 4, 16, 16
    Cout = 32            # backbone.fc.in_features
    FC_OUT = 512
    N_CLASSES = 10

    key = jax.random.PRNGKey(0)
    k = jax.random.split(key, 6)
    params = {
        "conv_w": 0.05 * jax.random.normal(k[0], (3, 3, Cin, Cout), jnp.float32),
        "conv_b": 0.05 * jax.random.normal(k[1], (1, Cout), jnp.float32),
        "fc_w":   0.05 * jax.random.normal(k[2], (Cout, FC_OUT), jnp.float32),
        "fc_b":   0.05 * jax.random.normal(k[3], (1, FC_OUT), jnp.float32),
        "unsup_w": 0.05 * jax.random.normal(k[4], (FC_OUT, N_CLASSES), jnp.float32),
        "unsup_b": 0.05 * jax.random.normal(k[5], (1, N_CLASSES), jnp.float32),
    }
    x = jax.random.normal(jax.random.PRNGKey(1), (N, Cin, H, W), jnp.float32)

    ref = jax.block_until_ready(reference_forward(x, params))
    fwd = jax.jit(unsuper_model_forward, static_argnames=("n_classes", "block_n"))

    # f32 MXU path: bit-parity validation against the f32 reference.
    w_f32, K = prepare_unsuper_params(params, H, W, mxu_dtype=jnp.float32)
    out_f32 = jax.block_until_ready(fwd(x, w_f32, n_classes=K))
    assert out_f32.shape == (N, N_CLASSES), out_f32.shape
    assert jnp.allclose(out_f32, ref, atol=1e-3, rtol=1e-3), float(
        jnp.max(jnp.abs(out_f32 - ref)))

    # bf16 MXU path (default; ~2x MXU throughput on v6e/v7x): looser tolerance.
    w_bf16, K = prepare_unsuper_params(params, H, W)   # mxu_dtype=bfloat16
    out_bf16 = jax.block_until_ready(fwd(x, w_bf16, n_classes=K))
    assert out_bf16.shape == (N, N_CLASSES), out_bf16.shape
    assert jnp.allclose(out_bf16, ref, atol=5e-2, rtol=5e-2), float(
        jnp.max(jnp.abs(out_bf16 - ref)))

    print("KERNEL_OK")
</pallas_src>

<mosaic_0001>
module attributes {stable_mosaic.version = 11 : i64} {
  func.func @_fused_forward_kernel(%arg0: i32, %arg1: memref<1x18x128xf32, #tpu.memory_space<vmem>>, %arg2: memref<384x512xf32, #tpu.memory_space<vmem>>, %arg3: memref<1x512xf32, #tpu.memory_space<vmem>>, %arg4: memref<512x128xf32, #tpu.memory_space<vmem>>, %arg5: memref<1x128xf32, #tpu.memory_space<vmem>>, %arg6: memref<1x1x128xf32, #tpu.memory_space<vmem>>) attributes {dimension_semantics = [#tpu.dimension_semantics<parallel>], iteration_bounds = array<i64: 2>, scalar_prefetch = 0 : i64, scratch_operands = 0 : i64, tpu.core_type = #tpu.core_type<tc>, window_params = [{transform_indices = @transform_0, window_bounds = array<i64: 1, 18, 128>}, {pipeline_mode = #tpu.pipeline_mode<synchronous>, transform_indices = @transform_1, window_bounds = array<i64: 384, 512>}, {pipeline_mode = #tpu.pipeline_mode<synchronous>, transform_indices = @transform_2, window_bounds = array<i64: 1, 512>}, {pipeline_mode = #tpu.pipeline_mode<synchronous>, transform_indices = @transform_3, window_bounds = array<i64: 512, 128>}, {pipeline_mode = #tpu.pipeline_mode<synchronous>, transform_indices = @transform_4, window_bounds = array<i64: 1, 128>}, {transform_indices = @transform_5, window_bounds = array<i64: 1, 1, 128>}]} {
    %c0 = arith.constant 0 : index
    %c0_0 = arith.constant 0 : index
    %c0_1 = arith.constant 0 : index
    %0 = vector.load %arg1[%c0, %c0_0, %c0_1] : memref<1x18x128xf32, #tpu.memory_space<vmem>>, vector<1x16x128xf32>
    %1 = vector.shape_cast %0 : vector<1x16x128xf32> to vector<16x128xf32>
    %c0_2 = arith.constant 0 : index
    %c1 = arith.constant 1 : index
    %c0_3 = arith.constant 0 : index
    %2 = vector.load %arg1[%c0_2, %c1, %c0_3] : memref<1x18x128xf32, #tpu.memory_space<vmem>>, vector<1x16x128xf32>
    %3 = vector.shape_cast %2 : vector<1x16x128xf32> to vector<16x128xf32>
    %c0_4 = arith.constant 0 : index
    %c2 = arith.constant 2 : index
    %c0_5 = arith.constant 0 : index
    %4 = vector.load %arg1[%c0_4, %c2, %c0_5] : memref<1x18x128xf32, #tpu.memory_space<vmem>>, vector<1x16x128xf32>
    %5 = vector.shape_cast %4 : vector<1x16x128xf32> to vector<16x128xf32>
    %6 = tpu.concatenate %1, %3, %5 in 1 : vector<16x128xf32>, vector<16x128xf32>, vector<16x128xf32> -> vector<16x384xf32>
    %c0_6 = arith.constant 0 : index
    %c0_7 = arith.constant 0 : index
    %7 = vector.load %arg2[%c0_6, %c0_7] : memref<384x512xf32, #tpu.memory_space<vmem>>, vector<384x512xf32>
    %cst = arith.constant dense<0.000000e+00> : vector<16x512xf32>
    %8 = tpu.matmul %6, %7, %cst {dimension_numbers = #tpu.dot_dimension_numbers<[1], [0], [0], [1], [0, 0, 1, 1], [], []>} : vector<16x384xf32>, vector<384x512xf32>, vector<16x512xf32> -> vector<16x512xf32>
    %c0_8 = arith.constant 0 : index
    %c0_9 = arith.constant 0 : index
    %9 = vector.load %arg3[%c0_8, %c0_9] : memref<1x512xf32, #tpu.memory_space<vmem>>, vector<1x512xf32>
    %10 = vector.broadcast %9 : vector<1x512xf32> to vector<16x512xf32>
    %11 = arith.addf %8, %10 : vector<16x512xf32>
    %cst_10 = arith.constant 0.000000e+00 : f32
    %12 = vector.broadcast %cst_10 : f32 to vector<16x512xf32>
    %13 = arith.maximumf %11, %12 : vector<16x512xf32>
    %14 = vector.shape_cast %13 : vector<16x512xf32> to vector<1x16x512xf32>
    %cst_11 = arith.constant dense<0.000000e+00> : vector<1x512xf32>
    %15 = vector.multi_reduction <add>, %14, %cst_11 [1] : vector<1x16x512xf32> to vector<1x512xf32>
    %c0_12 = arith.constant 0 : index
    %c0_13 = arith.constant 0 : index
    %16 = vector.load %arg4[%c0_12, %c0_13] : memref<512x128xf32, #tpu.memory_space<vmem>>, vector<512x128xf32>
    %cst_14 = arith.constant dense<0.000000e+00> : vector<1x128xf32>
    %17 = tpu.matmul %15, %16, %cst_14 {dimension_numbers = #tpu.dot_dimension_numbers<[1], [0], [0], [1], [0, 0, 1, 1], [], []>} : vector<1x512xf32>, vector<512x128xf32>, vector<1x128xf32> -> vector<1x128xf32>
    %c0_15 = arith.constant 0 : index
    %c0_16 = arith.constant 0 : index
    %18 = vector.load %arg5[%c0_15, %c0_16] : memref<1x128xf32, #tpu.memory_space<vmem>>, vector<1x128xf32>
    %19 = arith.addf %17, %18 : vector<1x128xf32>
    %c0_17 = arith.constant 0 : index
    %c0_18 = arith.constant 0 : index
    %c0_19 = arith.constant 0 : index
    %20 = vector.load %arg6[%c0_17, %c0_18, %c0_19] : memref<1x1x128xf32, #tpu.memory_space<vmem>>, vector<1x1x128xf32>
    %21 = vector.shape_cast %20 : vector<1x1x128xf32> to vector<1x128xf32>
    %22 = vector.shape_cast %19 : vector<1x128xf32> to vector<1x1x128xf32>
    tpu.vector_store %arg6[%c0_17, %c0_18, %c0_19], %22 {strides = array<i32>} : memref<1x1x128xf32, #tpu.memory_space<vmem>>, vector<1x1x128xf32>,
    return
  }
  func.func @transform_0(%arg0: i32) -> (i32, i32, i32) {
    %c0_i32 = arith.constant 0 : i32
    %c0_i32_0 = arith.constant 0 : i32
    %c0_i32_1 = arith.constant 0 : i32
    return %arg0, %c0_i32, %c0_i32_0 : i32, i32, i32
  }
  func.func @transform_1(%arg0: i32) -> (i32, i32) {
    %c0_i32 = arith.constant 0 : i32
    %c0_i32_0 = arith.constant 0 : i32
    %c0_i32_1 = arith.constant 0 : i32
    return %c0_i32, %c0_i32_0 : i32, i32
  }
  func.func @transform_2(%arg0: i32) -> (i32, i32) {
    %c0_i32 = arith.constant 0 : i32
    %c0_i32_0 = arith.constant 0 : i32
    %c0_i32_1 = arith.constant 0 : i32
    return %c0_i32, %c0_i32_0 : i32, i32
  }
  func.func @transform_3(%arg0: i32) -> (i32, i32) {
    %c0_i32 = arith.constant 0 : i32
    %c0_i32_0 = arith.constant 0 : i32
    %c0_i32_1 = arith.constant 0 : i32
    return %c0_i32, %c0_i32_0 : i32, i32
  }
  func.func @transform_4(%arg0: i32) -> (i32, i32) {
    %c0_i32 = arith.constant 0 : i32
    %c0_i32_0 = arith.constant 0 : i32
    %c0_i32_1 = arith.constant 0 : i32
    return %c0_i32, %c0_i32_0 : i32, i32
  }
  func.func @transform_5(%arg0: i32) -> (i32, i32, i32) {
    %c0_i32 = arith.constant 0 : i32
    %c0_i32_0 = arith.constant 0 : i32
    %c0_i32_1 = arith.constant 0 : i32
    return %arg0, %c0_i32, %c0_i32_0 : i32, i32, i32
  }
}

</mosaic_0001>

<bundles_post_ra>
// kernel: unsuper_model_forward.1
= control target key start
LH: loop header
LB: loop body
LE: loop exit
PB: predicated region body
PF: predicated region fallthrough
CT: control target
= control target key end

     0   :  { %10 = vsyncpa [#allocation3], 0  ;;  %s1974_s0 = inlined_call_operand.vmem [shape: f32[2,18,128], index: 0, kind: input, shape index: {}]   ;;  %s1975_s1 = inlined_call_operand.hbm [shape: f32[384,512], index: 1, kind: input, shape index: {}]   ;;  %s1976_s2 = inlined_call_operand.vmem [shape: f32[1,512], index: 2, kind: input, shape index: {}]   ;;  %s1977_s3 = inlined_call_operand.vmem [shape: f32[512,128], index: 3, kind: input, shape index: {}]   ;;  %s1978_s4 = inlined_call_operand.vmem [shape: f32[1,128], index: 4, kind: input, shape index: {}]   ;;  %s1979_s5 = inlined_call_operand.hbm [shape: f32[2,1,128], index: 5, kind: output, shape index: {}]  }
   0x1   :  { %11 = vsyncpa [#allocation4], 0 }
   0x2   :  { %13 = vsyncpa [#allocation4 + $0x1], 0  ;;  %s1624_s18 = smov 0   ;;  %s1626_s19 = smov 0  }
   0x3   :  { %s1628_s20 = smov 0   ;;  %s1630_s21 = smov 0  }
   0x4 LB: > { %s1645_s22 = sadd.s32 4294967295, %s1587_s21   ;;  %s1087_s23 = sadd.s32 4294967294, %s1587_s21   ;;  %s1587_s21 = sphi %s1630_s21, %s1995_s21   ;;  %s1583_s20 = sphi %s1628_s20, %s1994_s20   ;;  %s1579_s19 = sphi %s1626_s19, %s1993_s19   ;;  %s1575_s18 = sphi %s1624_s18, %s1992_s18  }
   0x5   : > { %s1649_s24 = sadd.s32 1, %s1587_s21   ;;  %s136_s25 = sadd.s32 1, %s1583_s20 }
   0x6   : > { %s133_s26 = ssub.s32 %s1587_s21, %s1649_s24  ;;  %p146_p0 = scmp.ne.s32.totalorder %s1583_s20, %s1579_s19 }
   0x7   : > { %p134_p1 = scmp.eq.s32.totalorder %s133_s26, 0  ;;  %p147_p2 = scmp.eq.s32.totalorder %s1645_s22, 1 }
   0x8   : > { %p152_p3 = scmp.ne.s32.totalorder %s1579_s19, %s1575_s18  ;;  %p153_p4 = scmp.eq.s32.totalorder %s1087_s23, 1 }
   0x9   : > { %s1660_s27 = scalar_select %p134_p1, %s1583_s20, %s136_s25  }
   0xa   : > { %p1662_p5 = por %p147_p2, %p146_p0  ;;  %p1666_p6 = por %p153_p4, %p152_p3 }
   0xb   : > { %p1088_p7 = scmp.ge.s32.totalorder %s1587_s21, 1  ;;  %p160_p8 = scmp.lt.s32.totalorder %s1587_s21, 3 }
   0xc   : > { %s1983_s28 = scalar_select %p1662_p5, 1, 0 }
   0xd   : > { %s1984_s29 = scalar_select %p1666_p6, 1, 0 }
   0xe   : > { %p1980_p9 = scmp.eq.s32.totalorder %s1645_s22, 0  ;;  %p1673_p10 = pnand %p1088_p7, %p160_p8 }
   0xf   : > { %s1589_s6 = smov [#allocation2]   ;;  %s1493_s11 = scalar_lea.hbm %s1975_s1, 24576 }
  0x10   : > { %s1985_s30 = scalar_select %p1673_p10, 1, 0 }
  0x11   : > { %s172_s7 = sshll.u32 %s1589_s6, 4  ;;  %p1446_p11 = pneg %p1673_p10  ;;  %s173_s7 = int_to_ptr.vmem [resolvable:$true] %s172_s7 }
  0x12   : > { %p1494_p13 = scmp.ne.s32.totalorder %s1975_s1, %s1493_s11  ;;  %p1500_p3 = scmp.lt.u32.totalorder %s1493_s11, %s1975_s1 }
  0x13   : > { %p1681_p12 = pnand %p1980_p9, %p1446_p11 }
  0x15   : > { %p1495_p0 = pneg %p1681_p12 }
  0x17   : > { %p1496_p1 = pnand %p1495_p0, %p1494_p13 }
  0x19   : > { %p1497_p2 = pneg %p1496_p1 }
  0x1b   : > { %p1502_p4 = pnand %p1500_p3, %p1497_p2 }
  0x1d   : > { %1505 = shalt.err (!%p1502_p4)
}
  0x1e   : > { %s1506_s16 = scalar_lea.vmem %s173_s7, 24576  ;;  %p1514_p9 = scmp.lt.s32.totalorder %s173_s7, %s173_s7 }
  0x1f   : > { %p1507_p7 = scmp.ne.s32.totalorder %s173_s7, %s1506_s16  ;;  %p1515_p6 = scmp.lt.s32.totalorder %s1506_s16, %s1506_s16 }
  0x21   : > { %p1509_p8 = pnand %p1507_p7, %p1495_p0  ;;  %p1516_p5 = por %p1515_p6, %p1514_p9 }
  0x23   : > { %p1510_p11 = pneg %p1509_p8 }
  0x25   : > { %p1517_p10 = pnand %p1516_p5, %p1510_p11 }
  0x27   : > { %1520 = shalt.err (!%p1517_p10)
}
  0x28   : > { %s1590_s17 = smov 512   ;;  %s1591_s23 = smov 32  }
  0x29   : > { %1449 = dma.hbm_to_vmem [thread:$0]  (!%p1681_p12), %s1975_s1, 24576, %s173_s7, [#allocation3], %s1590_s17, %s1590_s17, %s1591_s23  }
  0x2a   : > { %p1987_p13 = scmp.ne.s32.totalorder %s1985_s30, 0 }
  0x2b   : > { %p1988_p1 = scmp.eq.s32.totalorder (!%p1987_p13), %s1645_s22, 0 }
  0x2c   : > { %205 = sbr.rel (%p1987_p13) target bundleno = 621 (0x26d), region = 40 }
  0x33   : > { %1566 = dma.done.wait (%p1988_p1), [#allocation3], 24576   ;;  %p1989_p0 = pmov %p1988_p1 }
  0x34   : > { %v244_v0 = vld [vmem:[#allocation2 + $0x8] sm:$0xff]  ;;  %v246_v2 = vld [vmem:[#allocation2 + $0x18] sm:$0xff]  ;;  %v243_v5 = vld [vmem:[#allocation2] sm:$0xff]  ;;  %p232_p5 = scmp.lt.s32.totalorder %s1645_s22, 1  ;;  %s230_s14 = sand.u32 1, %s1579_s19  }
  0x35   : > { %1568 = vsyncadd (%p1989_p0), [#allocation3], 4294942720  ;;  %v248_v1 = vld [vmem:[#allocation2 + $0x28] sm:$0xff]  ;;  %v250_v4 = vld [vmem:[#allocation2 + $0x38] sm:$0xff]  ;;  %s1094_s16 = sshll.u32 %s1645_s22, 4  ;;  %s231_s17 = scalar_lea.vmem [#allocation5], %s230_s14 }
  0x36   : > { %v1167_v3 = vpack.c.bf16 %v248_v1, %v244_v0  ;;  %v247_v6 = vld [vmem:[#allocation2 + $0x20] sm:$0xff]  ;;  %v1263_v7 = vpack.c.bf16 %v250_v4, %v246_v2  ;;  %v245_v9 = vld [vmem:[#allocation2 + $0x10] sm:$0xff]  ;;  %v252_v11 = vld [vmem:[#allocation2 + $0x48] sm:$0xff]  ;;  %s1711_s30 = scalar_select %p232_p5, %s1645_s22, 1 }
  0x37   : > { %v1169_v8 = vpack.c.bf16 %v247_v6, %v243_v5  ;;  %v249_v10 = vld [vmem:[#allocation2 + $0x30] sm:$0xff]  ;;  %v256_v13 = vld [vmem:[#allocation2 + $0x68] sm:$0xff]  ;;  %v254_v14 = vld [vmem:[#allocation2 + $0x58] sm:$0xff]  ;;  %s1020_s23 = sshll.u32 %s231_s17, 4  ;;  %p1990_p9 = scmp.ne.s32.totalorder %s1983_s28, 0  ;;  %s1934_s23 = int_to_ptr.vmem [resolvable:$true] %s1020_s23 }
  0x38   : > { %1168 = vmatprep.subr.bf16.mxu0 %v1167_v3  ;;  %v1265_v12 = vpack.c.bf16 %v249_v10, %v245_v9  ;;  %v258_v15 = vld [vmem:[#allocation2 + $0x78] sm:$0xff]  ;;  %1264 = vmatprep.subr.bf16.mxu1 %v1263_v7  ;;  %v1171_v16 = vpack.c.bf16 %v256_v13, %v252_v11  ;;  %v251_v18 = vld [vmem:[#allocation2 + $0x40] sm:$0xff]  ;;  %v253_v20 = vld [vmem:[#allocation2 + $0x50] sm:$0xff]  ;;  %s1439_s6 = smul.u32 24, %s1711_s30  ;;  %s1932_s30 = scalar_lea.hbm %s1979_s5, %s1094_s16 }
  0x39   : > { %1170 = vmatpush1.bf16.msra.mxu0 %v1169_v8  ;;  %v1267_v17 = vpack.c.bf16 %v258_v15, %v254_v14  ;;  %v255_v19 = vld [vmem:[#allocation2 + $0x60] sm:$0xff]  ;;  %v257_v22 = vld [vmem:[#allocation2 + $0x70] sm:$0xff]  ;;  %v260_v23 = vld [vmem:[#allocation2 + $0x88] sm:$0xff]  ;;  %s1521_s7 = scalar_lea.vmem %s1934_s23, 16  ;;  %s1593_s22 = smov [#allocation5]  }
  0x3a   : > { %1266 = vmatpush1.bf16.msra.mxu1 %v1265_v12  ;;  %v1173_v21 = vpack.c.bf16 %v255_v19, %v251_v18  ;;  %v264_v24 = vld [vmem:[#allocation2 + $0xa8] sm:$0xff]  ;;  %1172 = vmatprep.subr.bf16.mxu0 %v1171_v16  ;;  %v1269_v25 = vpack.c.bf16 %v257_v22, %v253_v20  ;;  %v262_v27 = vld [vmem:[#allocation2 + $0x98] sm:$0xff]  ;;  %v259_v29 = vld [vmem:[#allocation2 + $0x80] sm:$0xff]  ;;  %s1717_s9 = scalar_lea.vmem %s1974_s0, %s1439_s6  ;;  %s1008_s6 = scalar_lea.sflag [#allocation4], %s230_s14 }
  0x3b   : > { %1268 = vmatprep.subr.bf16.mxu1 %v1267_v17  ;;  %v1175_v26 = vpack.c.bf16 %v264_v24, %v260_v23  ;;  %v266_v28 = vld [vmem:[#allocation2 + $0xb8] sm:$0xff]  ;;  %v263_v31 = vld [vmem:[#allocation2 + $0xa0] sm:$0xff]  ;;  %v261_v32 = vld [vmem:[#allocation2 + $0x90] sm:$0xff]  ;;  %p1522_p6 = scmp.ne.s32.totalorder %s1934_s23, %s1521_s7  ;;  %s1525_s8 = sshll.u32 %s1593_s22, 4  ;;  %s1526_s8 = int_to_ptr.vmem [resolvable:$false] %s1525_s8 }
  0x3c   : > { %v1271_v30 = vpack.c.bf16 %v266_v28, %v262_v27  ;;  %v265_v33 = vld [vmem:[#allocation2 + $0xb0] sm:$0xff]  ;;  %v1177_v34 = vpack.c.bf16 %v263_v31, %v259_v29  ;;  %v268_v35 = vld [vmem:[#allocation2 + $0xc8] sm:$0xff]  ;;  %v270_v37 = vld [vmem:[#allocation2 + $0xd8] sm:$0xff]  ;;  %s1527_s10 = scalar_lea.vmem %s1526_s8, 32  ;;  %p1528_p2 = scmp.lt.s32.totalorder %s1934_s23, %s1526_s8 }
  0x3d   : > { %1174 = vmatpush1.bf16.msra.mxu0 %v1173_v21  ;;  %v272_v36 = vld [vmem:[#allocation2 + $0xe8] sm:$0xff]  ;;  %v1273_v38 = vpack.c.bf16 %v265_v33, %v261_v32  ;;  %v274_v40 = vld [vmem:[#allocation2 + $0xf8] sm:$0xff]  ;;  %v267_v41 = vld [vmem:[#allocation2 + $0xc0] sm:$0xff]  ;;  %p1523_p10 = pnand %p1522_p6, %p1990_p9  ;;  %p1529_p3 = scmp.lt.s32.totalorder %s1527_s10, %s1521_s7 }
  0x3e   : > { %1270 = vmatpush1.bf16.msra.mxu1 %v1269_v25  ;;  %1176 = vmatprep.subr.bf16.mxu0 %v1175_v26  ;;  %v1179_v39 = vpack.c.bf16 %v272_v36, %v268_v35  ;;  %v271_v42 = vld [vmem:[#allocation2 + $0xe0] sm:$0xff]  ;;  %v1275_v43 = vpack.c.bf16 %v274_v40, %v270_v37  ;;  %v269_v44 = vld [vmem:[#allocation2 + $0xd0] sm:$0xff]  ;;  %v276_v46 = vld [vmem:[#allocation2 + $0x108] sm:$0xff] }
  0x3f   : > { %1272 = vmatprep.subr.bf16.mxu1 %v1271_v30  ;;  %v273_v45 = vld [vmem:[#allocation2 + $0xf0] sm:$0xff]  ;;  %v280_v47 = vld [vmem:[#allocation2 + $0x128] sm:$0xff]  ;;  %v278_v48 = vld [vmem:[#allocation2 + $0x118] sm:$0xff]  ;;  %v1181_v50 = vpack.c.bf16 %v271_v42, %v267_v41  ;;  %p1524_p12 = pneg %p1523_p10  ;;  %p1530_p4 = por %p1529_p3, %p1528_p2 }
  0x40   : > { %v282_v49 = vld [vmem:[#allocation2 + $0x138] sm:$0xff]  ;;  %v1277_v51 = vpack.c.bf16 %v273_v45, %v269_v44  ;;  %v1183_v52 = vpack.c.bf16 %v280_v47, %v276_v46  ;;  %v275_v53 = vld [vmem:[#allocation2 + $0x100] sm:$0xff]  ;;  %v277_v55 = vld [vmem:[#allocation2 + $0x110] sm:$0xff] }
  0x41   : > { %1178 = vmatpush1.bf16.msra.mxu0 %v1177_v34  ;;  %v279_v54 = vld [vmem:[#allocation2 + $0x120] sm:$0xff]  ;;  %v1279_v56 = vpack.c.bf16 %v282_v49, %v278_v48  ;;  %v281_v57 = vld [vmem:[#allocation2 + $0x130] sm:$0xff]  ;;  %v284_v58 = vld [vmem:[#allocation2 + $0x148] sm:$0xff]  ;;  %p1531_p7 = pnand %p1530_p4, %p1524_p12 }
  0x42   : > { %1274 = vmatpush1.bf16.msra.mxu1 %v1273_v38  ;;  %1180 = vmatprep.subr.bf16.mxu0 %v1179_v39  ;;  %v288_v59 = vld [vmem:[#allocation2 + $0x168] sm:$0xff]  ;;  %v286_v60 = vld [vmem:[#allocation2 + $0x158] sm:$0xff]  ;;  %v1185_v62 = vpack.c.bf16 %v279_v54, %v275_v53  ;;  %v1281_v63 = vpack.c.bf16 %v281_v57, %v277_v55  ;;  %v283_v1 = vld [vmem:[#allocation2 + $0x140] sm:$0xff] }
  0x43   : > { %1276 = vmatprep.subr.bf16.mxu1 %v1275_v43  ;;  %v290_v61 = vld [vmem:[#allocation2 + $0x178] sm:$0xff]  ;;  %v1187_v0 = vpack.c.bf16 %v288_v59, %v284_v58  ;;  %v287_v2 = vld [vmem:[#allocation2 + $0x160] sm:$0xff]  ;;  %v285_v3 = vld [vmem:[#allocation2 + $0x150] sm:$0xff] }
  0x44   : > { %v1283_v4 = vpack.c.bf16 %v290_v61, %v286_v60  ;;  %v289_v5 = vld [vmem:[#allocation2 + $0x170] sm:$0xff]  ;;  %v292_v6 = vld [vmem:[#allocation2 + $0x188] sm:$0xff]  ;;  %v294_v8 = vld [vmem:[#allocation2 + $0x198] sm:$0xff]  ;;  %v1189_v10 = vpack.c.bf16 %v287_v2, %v283_v1 }
  0x45   : > { %1182 = vmatpush1.bf16.msra.mxu0 %v1181_v50  ;;  %v296_v7 = vld [vmem:[#allocation2 + $0x1a8] sm:$0xff]  ;;  %v298_v9 = vld [vmem:[#allocation2 + $0x1b8] sm:$0xff]  ;;  %v1285_v11 = vpack.c.bf16 %v289_v5, %v285_v3  ;;  %v291_v13 = vld [vmem:[#allocation2 + $0x180] sm:$0xff] }
  0x46   : > { %1278 = vmatpush1.bf16.msra.mxu1 %v1277_v51  ;;  %1184 = vmatprep.subr.bf16.mxu0 %v1183_v52  ;;  %v1191_v12 = vpack.c.bf16 %v296_v7, %v292_v6  ;;  %v295_v14 = vld [vmem:[#allocation2 + $0x1a0] sm:$0xff]  ;;  %v293_v15 = vld [vmem:[#allocation2 + $0x190] sm:$0xff]  ;;  %v1287_v16 = vpack.c.bf16 %v298_v9, %v294_v8  ;;  %v300_v18 = vld [vmem:[#allocation2 + $0x1c8] sm:$0xff] }
  0x47   : > { %1280 = vmatprep.subr.bf16.mxu1 %v1279_v56  ;;  %v297_v17 = vld [vmem:[#allocation2 + $0x1b0] sm:$0xff]  ;;  %v304_v19 = vld [vmem:[#allocation2 + $0x1e8] sm:$0xff]  ;;  %v302_v20 = vld [vmem:[#allocation2 + $0x1d8] sm:$0xff]  ;;  %v1193_v22 = vpack.c.bf16 %v295_v14, %v291_v13 }
  0x48   : > { %v306_v21 = vld [vmem:[#allocation2 + $0x1f8] sm:$0xff]  ;;  %v1289_v23 = vpack.c.bf16 %v297_v17, %v293_v15  ;;  %v1195_v24 = vpack.c.bf16 %v304_v19, %v300_v18  ;;  %v299_v25 = vld [vmem:[#allocation2 + $0x1c0] sm:$0xff]  ;;  %v301_v27 = vld [vmem:[#allocation2 + $0x1d0] sm:$0xff] }
  0x49   : > { %1186 = vmatpush1.bf16.msra.mxu0 %v1185_v62  ;;  %v303_v26 = vld [vmem:[#allocation2 + $0x1e0] sm:$0xff]  ;;  %v1291_v28 = vpack.c.bf16 %v306_v21, %v302_v20  ;;  %v305_v29 = vld [vmem:[#allocation2 + $0x1f0] sm:$0xff]  ;;  %v308_v30 = vld [vmem:[#allocation2 + $0x208] sm:$0xff] }
  0x4a   : > { %1282 = vmatpush1.bf16.msra.mxu1 %v1281_v63  ;;  %1188 = vmatprep.subr.bf16.mxu0 %v1187_v0  ;;  %v312_v31 = vld [vmem:[#allocation2 + $0x228] sm:$0xff]  ;;  %v310_v32 = vld [vmem:[#allocation2 + $0x218] sm:$0xff]  ;;  %v1197_v34 = vpack.c.bf16 %v303_v26, %v299_v25  ;;  %v1293_v35 = vpack.c.bf16 %v305_v29, %v301_v27  ;;  %v307_v37 = vld [vmem:[#allocation2 + $0x200] sm:$0xff] }
  0x4b   : > { %1284 = vmatprep.subr.bf16.mxu1 %v1283_v4  ;;  %v314_v33 = vld [vmem:[#allocation2 + $0x238] sm:$0xff]  ;;  %v1199_v36 = vpack.c.bf16 %v312_v31, %v308_v30  ;;  %v311_v38 = vld [vmem:[#allocation2 + $0x220] sm:$0xff]  ;;  %v309_v39 = vld [vmem:[#allocation2 + $0x210] sm:$0xff] }
  0x4c   : > { %v1295_v40 = vpack.c.bf16 %v314_v33, %v310_v32  ;;  %v313_v41 = vld [vmem:[#allocation2 + $0x230] sm:$0xff]  ;;  %v316_v42 = vld [vmem:[#allocation2 + $0x248] sm:$0xff]  ;;  %v318_v44 = vld [vmem:[#allocation2 + $0x258] sm:$0xff]  ;;  %v1201_v46 = vpack.c.bf16 %v311_v38, %v307_v37 }
  0x4d   : > { %1190 = vmatpush1.bf16.msra.mxu0 %v1189_v10  ;;  %v320_v43 = vld [vmem:[#allocation2 + $0x268] sm:$0xff]  ;;  %v322_v45 = vld [vmem:[#allocation2 + $0x278] sm:$0xff]  ;;  %v1297_v47 = vpack.c.bf16 %v313_v41, %v309_v39  ;;  %v315_v49 = vld [vmem:[#allocation2 + $0x240] sm:$0xff] }
  0x4e   : > { %1286 = vmatpush1.bf16.msra.mxu1 %v1285_v11  ;;  %1192 = vmatprep.subr.bf16.mxu0 %v1191_v12  ;;  %v1203_v48 = vpack.c.bf16 %v320_v43, %v316_v42  ;;  %v319_v50 = vld [vmem:[#allocation2 + $0x260] sm:$0xff]  ;;  %v317_v51 = vld [vmem:[#allocation2 + $0x250] sm:$0xff]  ;;  %v1299_v52 = vpack.c.bf16 %v322_v45, %v318_v44  ;;  %v324_v54 = vld [vmem:[#allocation2 + $0x288] sm:$0xff] }
  0x4f   : > { %1288 = vmatprep.subr.bf16.mxu1 %v1287_v16  ;;  %v321_v53 = vld [vmem:[#allocation2 + $0x270] sm:$0xff]  ;;  %v328_v55 = vld [vmem:[#allocation2 + $0x2a8] sm:$0xff]  ;;  %v326_v56 = vld [vmem:[#allocation2 + $0x298] sm:$0xff]  ;;  %v1205_v58 = vpack.c.bf16 %v319_v50, %v315_v49 }
  0x50   : > { %v330_v57 = vld [vmem:[#allocation2 + $0x2b8] sm:$0xff]  ;;  %v1301_v59 = vpack.c.bf16 %v321_v53, %v317_v51  ;;  %v1207_v60 = vpack.c.bf16 %v328_v55, %v324_v54  ;;  %v323_v61 = vld [vmem:[#allocation2 + $0x280] sm:$0xff]  ;;  %v325_v63 = vld [vmem:[#allocation2 + $0x290] sm:$0xff] }
  0x51   : > { %1194 = vmatpush1.bf16.msra.mxu0 %v1193_v22  ;;  %v327_v62 = vld [vmem:[#allocation2 + $0x2a0] sm:$0xff]  ;;  %v1303_v0 = vpack.c.bf16 %v330_v57, %v326_v56  ;;  %v329_v1 = vld [vmem:[#allocation2 + $0x2b0] sm:$0xff]  ;;  %v332_v2 = vld [vmem:[#allocation2 + $0x2c8] sm:$0xff] }
  0x52   : > { %1290 = vmatpush1.bf16.msra.mxu1 %v1289_v23  ;;  %1196 = vmatprep.subr.bf16.mxu0 %v1195_v24  ;;  %v336_v3 = vld [vmem:[#allocation2 + $0x2e8] sm:$0xff]  ;;  %v334_v4 = vld [vmem:[#allocation2 + $0x2d8] sm:$0xff]  ;;  %v1209_v6 = vpack.c.bf16 %v327_v62, %v323_v61  ;;  %v331_v7 = vld [vmem:[#allocation2 + $0x2c0] sm:$0xff]  ;;  %v1305_v8 = vpack.c.bf16 %v329_v1, %v325_v63 }
  0x53   : > { %1292 = vmatprep.subr.bf16.mxu1 %v1291_v28  ;;  %v338_v5 = vld [vmem:[#allocation2 + $0x2f8] sm:$0xff]  ;;  %v1211_v9 = vpack.c.bf16 %v336_v3, %v332_v2  ;;  %v335_v10 = vld [vmem:[#allocation2 + $0x2e0] sm:$0xff]  ;;  %v333_v11 = vld [vmem:[#allocation2 + $0x2d0] sm:$0xff] }
  0x54   : > { %v337_v12 = vld [vmem:[#allocation2 + $0x2f0] sm:$0xff]  ;;  %v1307_v13 = vpack.c.bf16 %v338_v5, %v334_v4  ;;  %v340_v14 = vld [vmem:[#allocation2 + $0x308] sm:$0xff]  ;;  %v342_v17 = vld [vmem:[#allocation2 + $0x318] sm:$0xff]  ;;  %v1213_v19 = vpack.c.bf16 %v335_v10, %v331_v7 }
  0x55   : > { %1198 = vmatpush1.bf16.msra.mxu0 %v1197_v34  ;;  %v344_v15 = vld [vmem:[#allocation2 + $0x328] sm:$0xff]  ;;  %v346_v18 = vld [vmem:[#allocation2 + $0x338] sm:$0xff]  ;;  %v1309_v20 = vpack.c.bf16 %v337_v12, %v333_v11  ;;  %v339_v22 = vld [vmem:[#allocation2 + $0x300] sm:$0xff] }
  0x56   : > { %1294 = vmatpush1.bf16.msra.mxu1 %v1293_v35  ;;  %1200 = vmatprep.subr.bf16.mxu0 %v1199_v36  ;;  %v239_v16 = vld [vmem:[%s1717_s9 + $0x1] sm:$0xff]  ;;  %v1215_v21 = vpack.c.bf16 %v344_v15, %v340_v14  ;;  %v341_v24 = vld [vmem:[#allocation2 + $0x310] sm:$0xff]  ;;  %v1311_v25 = vpack.c.bf16 %v346_v18, %v342_v17  ;;  %v350_v29 = vld [vmem:[#allocation2 + $0x358] sm:$0xff] }
  0x57   : > { %1296 = vmatprep.subr.bf16.mxu1 %v1295_v40  ;;  %521 = vmatprep.mubr.f32.mxu0 %v239_v16  ;;  %v343_v23 = vld [vmem:[#allocation2 + $0x320] sm:$0xff]  ;;  %v345_v26 = vld [vmem:[#allocation2 + $0x330] sm:$0xff]  ;;  %v348_v27 = vld [vmem:[#allocation2 + $0x348] sm:$0xff] }
  0x58   : > { %675 = vmatprep.mubr.f32.mxu1 %v239_v16  ;;  %v352_v28 = vld [vmem:[#allocation2 + $0x368] sm:$0xff]  ;;  %v354_v30 = vld [vmem:[#allocation2 + $0x378] sm:$0xff]  ;;  %v1217_v31 = vpack.c.bf16 %v343_v23, %v339_v22  ;;  %v1313_v32 = vpack.c.bf16 %v345_v26, %v341_v24  ;;  %v347_v34 = vld [vmem:[#allocation2 + $0x340] sm:$0xff] }
  0x59   : > { %1202 = vmatpush1.bf16.msra.mxu0 %v1201_v46  ;;  %v1219_v33 = vpack.c.bf16 %v352_v28, %v348_v27  ;;  %v351_v35 = vld [vmem:[#allocation2 + $0x360] sm:$0xff]  ;;  %v349_v36 = vld [vmem:[#allocation2 + $0x350] sm:$0xff]  ;;  %v1315_v37 = vpack.c.bf16 %v354_v30, %v350_v29  ;;  %v356_v39 = vld [vmem:[#allocation2 + $0x388] sm:$0xff] }
  0x5a   : > { %1298 = vmatpush1.bf16.msra.mxu1 %v1297_v47  ;;  %1204 = vmatprep.subr.bf16.mxu0 %v1203_v48  ;;  %v353_v38 = vld [vmem:[#allocation2 + $0x370] sm:$0xff]  ;;  %v360_v40 = vld [vmem:[#allocation2 + $0x3a8] sm:$0xff]  ;;  %v358_v41 = vld [vmem:[#allocation2 + $0x398] sm:$0xff]  ;;  %v1221_v43 = vpack.c.bf16 %v351_v35, %v347_v34 }
  0x5b   : > { %1300 = vmatprep.subr.bf16.mxu1 %v1299_v52  ;;  %v362_v42 = vld [vmem:[#allocation2 + $0x3b8] sm:$0xff]  ;;  %v1317_v44 = vpack.c.bf16 %v353_v38, %v349_v36  ;;  %v1223_v45 = vpack.c.bf16 %v360_v40, %v356_v39  ;;  %v355_v46 = vld [vmem:[#allocation2 + $0x380] sm:$0xff]  ;;  %v357_v48 = vld [vmem:[#allocation2 + $0x390] sm:$0xff] }
  0x5c   : > { %v359_v47 = vld [vmem:[#allocation2 + $0x3a0] sm:$0xff]  ;;  %v1319_v49 = vpack.c.bf16 %v362_v42, %v358_v41  ;;  %v361_v50 = vld [vmem:[#allocation2 + $0x3b0] sm:$0xff]  ;;  %v364_v51 = vld [vmem:[#allocation2 + $0x3c8] sm:$0xff] }
  0x5d   : > { %1206 = vmatpush1.bf16.msra.mxu0 %v1205_v58  ;;  %v368_v52 = vld [vmem:[#allocation2 + $0x3e8] sm:$0xff]  ;;  %v366_v53 = vld [vmem:[#allocation2 + $0x3d8] sm:$0xff]  ;;  %v1225_v55 = vpack.c.bf16 %v359_v47, %v355_v46  ;;  %v1321_v56 = vpack.c.bf16 %v361_v50, %v357_v48  ;;  %v363_v58 = vld [vmem:[#allocation2 + $0x3c0] sm:$0xff] }
  0x5e   : > { %1302 = vmatpush1.bf16.msra.mxu1 %v1301_v59  ;;  %1208 = vmatprep.subr.bf16.mxu0 %v1207_v60  ;;  %v370_v54 = vld [vmem:[#allocation2 + $0x3f8] sm:$0xff]  ;;  %v1227_v57 = vpack.c.bf16 %v368_v52, %v364_v51  ;;  %v367_v59 = vld [vmem:[#allocation2 + $0x3e0] sm:$0xff]  ;;  %v365_v60 = vld [vmem:[#allocation2 + $0x3d0] sm:$0xff]  ;;  %v1592_v52 = vmov 0.0  }
  0x5f   : > { %1304 = vmatprep.subr.bf16.mxu1 %v1303_v0  ;;  %v1323_v61 = vpack.c.bf16 %v370_v54, %v366_v53  ;;  %v369_v62 = vld [vmem:[#allocation2 + $0x3f0] sm:$0xff]  ;;  %v372_v63 = vld [vmem:[#allocation2 + $0x408] sm:$0xff]  ;;  %v374_v1 = vld [vmem:[#allocation2 + $0x418] sm:$0xff]  ;;  %v1229_v3 = vpack.c.bf16 %v367_v59, %v363_v58 }
  0x60   : > { %v376_v0 = vld [vmem:[#allocation2 + $0x428] sm:$0xff]  ;;  %v378_v2 = vld [vmem:[#allocation2 + $0x438] sm:$0xff]  ;;  %v1325_v4 = vpack.c.bf16 %v369_v62, %v365_v60  ;;  %v375_v7 = vld [vmem:[#allocation2 + $0x420] sm:$0xff] }
  0x61   : > { %1210 = vmatpush1.bf16.msra.mxu0 %v1209_v6  ;;  %v1231_v5 = vpack.c.bf16 %v376_v0, %v372_v63  ;;  %v371_v6 = vld [vmem:[#allocation2 + $0x400] sm:$0xff]  ;;  %v377_v10 = vld [vmem:[#allocation2 + $0x430] sm:$0xff]  ;;  %v380_v11 = vld [vmem:[#allocation2 + $0x448] sm:$0xff] }
  0x62   : > { %1306 = vmatpush1.bf16.msra.mxu1 %v1305_v8  ;;  %1212 = vmatprep.subr.bf16.mxu0 %v1211_v9  ;;  %v373_v8 = vld [vmem:[#allocation2 + $0x410] sm:$0xff]  ;;  %v1327_v9 = vpack.c.bf16 %v378_v2, %v374_v1  ;;  %v384_v12 = vld [vmem:[#allocation2 + $0x468] sm:$0xff]  ;;  %v386_v14 = vld [vmem:[#allocation2 + $0x478] sm:$0xff]  ;;  %v1233_v16 = vpack.c.bf16 %v375_v7, %v371_v6 }
  0x63   : > { %1308 = vmatprep.subr.bf16.mxu1 %v1307_v13  ;;  %v382_v13 = vld [vmem:[#allocation2 + $0x458] sm:$0xff]  ;;  %v237_v15 = vld [vmem:[%s1717_s9] sm:$0xff]  ;;  %v1329_v17 = vpack.c.bf16 %v377_v10, %v373_v8  ;;  %v1235_v18 = vpack.c.bf16 %v384_v12, %v380_v11  ;;  %v385_v23 = vld [vmem:[#allocation2 + $0x470] sm:$0xff] }
  0x64   : > { %v1331_v22 = vpack.c.bf16 %v386_v14, %v382_v13  ;;  %v388_v24 = vld [vmem:[#allocation2 + $0x488] sm:$0xff]  ;;  %v390_v26 = vld [vmem:[#allocation2 + $0x498] sm:$0xff]  ;;  %v391_v34 = vld [vmem:[#allocation2 + $0x4a0] sm:$0xff] }
  0x65   : > { %1214 = vmatpush1.bf16.msra.mxu0 %v1213_v19  ;;  %v379_v19 = vld [vmem:[#allocation2 + $0x440] sm:$0xff]  ;;  %v394_v27 = vld [vmem:[#allocation2 + $0x4b8] sm:$0xff]  ;;  %v240_v28 = vld [vmem:[%s1717_s9 + $0x9] sm:$0xff] }
  0x66   : > { %1310 = vmatpush1.bf16.msra.mxu1 %v1309_v20  ;;  %1216 = vmatprep.subr.bf16.mxu0 %v1215_v21  ;;  %v383_v20 = vld [vmem:[#allocation2 + $0x460] sm:$0xff]  ;;  %v381_v21 = vld [vmem:[#allocation2 + $0x450] sm:$0xff]  ;;  %v238_v30 = vld [vmem:[%s1717_s9 + $0x8] sm:$0xff]  ;;  %v1335_v36 = vpack.c.bf16 %v394_v27, %v390_v26 }
  0x67   : > { %1312 = vmatprep.subr.bf16.mxu1 %v1311_v25  ;;  %v392_v25 = vld [vmem:[#allocation2 + $0x4a8] sm:$0xff]  ;;  %v1237_v29 = vpack.c.bf16 %v383_v20, %v379_v19  ;;  %v389_v35 = vld [vmem:[#allocation2 + $0x490] sm:$0xff]  ;;  %v398_v40 = vld [vmem:[#allocation2 + $0x4d8] sm:$0xff] }
  0x68   : > { %v396_v38 = vld [vmem:[#allocation2 + $0x4c8] sm:$0xff]  ;;  %v402_v41 = vld [vmem:[#allocation2 + $0x4f8] sm:$0xff]  ;;  %v399_v46 = vld [vmem:[#allocation2 + $0x4e0] sm:$0xff] }
  0x69   : > { %1218 = vmatpush1.bf16.msra.mxu0 %v1217_v31  ;;  %v1333_v31 = vpack.c.bf16 %v385_v23, %v381_v21  ;;  %v400_v39 = vld [vmem:[#allocation2 + $0x4e8] sm:$0xff]  ;;  %v397_v47 = vld [vmem:[#allocation2 + $0x4d0] sm:$0xff]  ;;  %v1339_v48 = vpack.c.bf16 %v402_v41, %v398_v40  ;;  %v406_v53 = vld [vmem:[#allocation2 + $0x518] sm:$0xff] }
  0x6a   : > { %1314 = vmatpush1.bf16.msra.mxu1 %v1313_v32  ;;  %1220 = vmatprep.subr.bf16.mxu0 %v1219_v33  ;;  %v1239_v32 = vpack.c.bf16 %v392_v25, %v388_v24  ;;  %v387_v33 = vld [vmem:[#allocation2 + $0x480] sm:$0xff]  ;;  %v404_v50 = vld [vmem:[#allocation2 + $0x508] sm:$0xff]  ;;  %v410_v54 = vld [vmem:[#allocation2 + $0x538] sm:$0xff] }
  0x6b   : > { %1316 = vmatprep.subr.bf16.mxu1 %v1315_v37  ;;  %v393_v37 = vld [vmem:[#allocation2 + $0x4b0] sm:$0xff]  ;;  %v1241_v42 = vpack.c.bf16 %v391_v34, %v387_v33  ;;  %v408_v51 = vld [vmem:[#allocation2 + $0x528] sm:$0xff]  ;;  %v403_v58 = vld [vmem:[#allocation2 + $0x500] sm:$0xff] }
  0x6c   : > { %v407_v59 = vld [vmem:[#allocation2 + $0x520] sm:$0xff]  ;;  %v405_v60 = vld [vmem:[#allocation2 + $0x510] sm:$0xff]  ;;  %v412_v63 = vld [vmem:[#allocation2 + $0x548] sm:$0xff] }
  0x6d   : > { %1222 = vmatpush1.bf16.msra.mxu0 %v1221_v43  ;;  %v1337_v43 = vpack.c.bf16 %v393_v37, %v389_v35  ;;  %v409_v62 = vld [vmem:[#allocation2 + $0x530] sm:$0xff]  ;;  %v416_v0 = vld [vmem:[#allocation2 + $0x568] sm:$0xff]  ;;  %v414_v1 = vld [vmem:[#allocation2 + $0x558] sm:$0xff] }
  0x6e   : > { %1318 = vmatpush1.bf16.msra.mxu1 %v1317_v44  ;;  %1224 = vmatprep.subr.bf16.mxu0 %v1223_v45  ;;  %v1243_v44 = vpack.c.bf16 %v400_v39, %v396_v38  ;;  %v395_v45 = vld [vmem:[#allocation2 + $0x4c0] sm:$0xff]  ;;  %v418_v2 = vld [vmem:[#allocation2 + $0x578] sm:$0xff]  ;;  %v413_v8 = vld [vmem:[#allocation2 + $0x550] sm:$0xff] }
  0x6f   : > { %1320 = vmatprep.subr.bf16.mxu1 %v1319_v49  ;;  %v401_v49 = vld [vmem:[#allocation2 + $0x4f0] sm:$0xff]  ;;  %v411_v6 = vld [vmem:[#allocation2 + $0x540] sm:$0xff]  ;;  %v420_v11 = vld [vmem:[#allocation2 + $0x588] sm:$0xff] }
  0x70   : > { %v415_v7 = vld [vmem:[#allocation2 + $0x560] sm:$0xff]  ;;  %v417_v10 = vld [vmem:[#allocation2 + $0x570] sm:$0xff]  ;;  %v424_v12 = vld [vmem:[#allocation2 + $0x5a8] sm:$0xff] }
  0x71   : > { %1226 = vmatpush1.bf16.msra.mxu0 %v1225_v55  ;;  %v1245_v55 = vpack.c.bf16 %v399_v46, %v395_v45  ;;  %v422_v13 = vld [vmem:[#allocation2 + $0x598] sm:$0xff]  ;;  %v423_v19 = vld [vmem:[#allocation2 + $0x5a0] sm:$0xff]  ;;  %v421_v20 = vld [vmem:[#allocation2 + $0x590] sm:$0xff] }
  0x72   : > { %1322 = vmatpush1.bf16.msra.mxu1 %v1321_v56  ;;  %1228 = vmatprep.subr.bf16.mxu0 %v1227_v57  ;;  %v1341_v56 = vpack.c.bf16 %v401_v49, %v397_v47  ;;  %v1247_v57 = vpack.c.bf16 %v408_v51, %v404_v50  ;;  %v426_v14 = vld [vmem:[#allocation2 + $0x5b8] sm:$0xff]  ;;  %v428_v23 = vld [vmem:[#allocation2 + $0x5c8] sm:$0xff]  ;;  %v433_v34 = vld [vmem:[#allocation2 + $0x5f0] sm:$0xff] }
  0x73   : > { %1324 = vmatprep.subr.bf16.mxu1 %v1323_v61  ;;  %v1343_v61 = vpack.c.bf16 %v410_v54, %v406_v53  ;;  %v1351_v21 = vpack.c.bf16 %v426_v14, %v422_v13  ;;  %v432_v24 = vld [vmem:[#allocation2 + $0x5e8] sm:$0xff]  ;;  %v430_v25 = vld [vmem:[#allocation2 + $0x5d8] sm:$0xff]  ;;  %v817_v35 = vld [vmem:[%s1977_s3 + $0x80] sm:$0xff] }
  0x74   : > { %v434_v26 = vld [vmem:[#allocation2 + $0x5f8] sm:$0xff]  ;;  %v849_v37 = vld [vmem:[%s1977_s3 + $0x180] sm:$0xff]  ;;  %v850_v38 = vld [vmem:[%s1977_s3 + $0x188] sm:$0xff] }
  0x75   : > { %1230 = vmatpush1.bf16.msra.mxu0 %v1229_v3  ;;  %v1249_v3 = vpack.c.bf16 %v407_v59, %v403_v58  ;;  %v1355_v33 = vpack.c.bf16 %v434_v26, %v430_v25  ;;  %v833_v45 = vld [vmem:[%s1977_s3 + $0x100] sm:$0xff]  ;;  %v834_v46 = vld [vmem:[%s1977_s3 + $0x108] sm:$0xff]  ;;  %v819_v47 = vld [vmem:[%s1977_s3 + $0x90] sm:$0xff] }
  0x76   : > { %1326 = vmatpush1.bf16.msra.mxu1 %v1325_v4  ;;  %1232 = vmatprep.subr.bf16.mxu0 %v1231_v5  ;;  %v1345_v4 = vpack.c.bf16 %v409_v62, %v405_v60  ;;  %v1251_v5 = vpack.c.bf16 %v416_v0, %v412_v63  ;;  %v241_v49 = vld [vmem:[%s1717_s9 + $0x2] sm:$0xff]  ;;  %v851_v50 = vld [vmem:[%s1977_s3 + $0x190] sm:$0xff]  ;;  %v852_v51 = vld [vmem:[%s1977_s3 + $0x198] sm:$0xff]  ;;  %v1393_v54 = vpack.c.bf16 %v834_v46, %v833_v45 }
  0x77   : > { %1328 = vmatprep.subr.bf16.mxu1 %v1327_v9  ;;  %v1347_v9 = vpack.c.bf16 %v418_v2, %v414_v1  ;;  %v1395_v58 = vpack.c.bf16 %v852_v51, %v851_v50  ;;  %v835_v59 = vld [vmem:[%s1977_s3 + $0x110] sm:$0xff]  ;;  %v836_v60 = vld [vmem:[%s1977_s3 + $0x118] sm:$0xff]  ;;  %v821_v0 = vld [vmem:[%s1977_s3 + $0xa0] sm:$0xff] }
  0x78   : > { %522 = vmatmul.mubr.f32.vlgmr.msra.gmra.mrb[0].mxu0 %v237_v15  ;;  %v1397_v63 = vpack.c.bf16 %v836_v60, %v835_v59  ;;  %v822_v1 = vld [vmem:[%s1977_s3 + $0xa8] sm:$0xff]  ;;  %v855_v13 = vld [vmem:[%s1977_s3 + $0x1b0] sm:$0xff]  ;;  %v857_v25 = vld [vmem:[%s1977_s3 + $0x1c0] sm:$0xff] }
  0x79   : > { %1234 = vmatpush1.bf16.msra.mxu0 %v1233_v16  ;;  %676 = vmatmul.mubr.f32.vlgmr.msra.gmra.mrb[0].mxu1 %v237_v15  ;;  %v1253_v15 = vpack.c.bf16 %v415_v7, %v411_v6  ;;  %v1349_v16 = vpack.c.bf16 %v417_v10, %v413_v8  ;;  %v1367_v2 = vpack.c.bf16 %v822_v1, %v821_v0  ;;  %v837_v8 = vld [vmem:[%s1977_s3 + $0x120] sm:$0xff]  ;;  %v844_v45 = vld [vmem:[%s1977_s3 + $0x158] sm:$0xff]  ;;  %v862_v51 = vld [vmem:[%s1977_s3 + $0x1e8] sm:$0xff] }
  0x7a   : > { %1330 = vmatpush1.bf16.msra.mxu1 %v1329_v17  ;;  %1236 = vmatprep.subr.bf16.mxu0 %v1235_v18  ;;  %v1255_v17 = vpack.c.bf16 %v424_v12, %v420_v11  ;;  %v419_v18 = vld [vmem:[#allocation2 + $0x580] sm:$0xff]  ;;  %v823_v11 = vld [vmem:[%s1977_s3 + $0xb0] sm:$0xff]  ;;  %v824_v12 = vld [vmem:[%s1977_s3 + $0xb8] sm:$0xff] }
  0x7b   : > { %1332 = vmatprep.subr.bf16.mxu1 %v1331_v22  ;;  %527 = vmatprep.mubr.f32.mxu0 %v240_v28  ;;  %v425_v22 = vld [vmem:[#allocation2 + $0x5b0] sm:$0xff]  ;;  %v1257_v27 = vpack.c.bf16 %v423_v19, %v419_v18  ;;  %v1371_v14 = vpack.c.bf16 %v824_v12, %v823_v11  ;;  %v864_v0 = vld [vmem:[%s1977_s3 + $0x1f8] sm:$0xff] }
  0x7c   : > { %681 = vmatprep.mubr.f32.mxu1 %v240_v28  ;;  %528 = vmatmul.mubr.f32.gmra.mrb[2].mxu0 %v238_v30  ;;  %v1353_v28 = vpack.c.bf16 %v425_v22, %v421_v20  ;;  %v839_v20 = vld [vmem:[%s1977_s3 + $0x130] sm:$0xff] }
  0x7d   : > { %1238 = vmatpush1.bf16.msra.mxu0 %v1237_v29  ;;  %682 = vmatmul.mubr.f32.gmra.mrb[2].mxu1 %v238_v30  ;;  %v1259_v29 = vpack.c.bf16 %v432_v24, %v428_v23  ;;  %v427_v30 = vld [vmem:[#allocation2 + $0x5c0] sm:$0xff]  ;;  %v826_v24 = vld [vmem:[%s1977_s3 + $0xc8] sm:$0xff]  ;;  %v831_v60 = vld [vmem:[%s1977_s3 + $0xf0] sm:$0xff] }
  0x7e   : > { %1334 = vmatpush1.bf16.msra.mxu1 %v1333_v31  ;;  %1240 = vmatprep.subr.bf16.mxu0 %v1239_v32  ;;  %v431_v31 = vld [vmem:[#allocation2 + $0x5e0] sm:$0xff]  ;;  %v429_v32 = vld [vmem:[#allocation2 + $0x5d0] sm:$0xff] }
  0x7f   : > { %1336 = vmatprep.subr.bf16.mxu1 %v1335_v36  ;;  %598 = vmatprep.mubr.f32.mxu0 %v1592_v52  ;;  %v818_v36 = vld [vmem:[%s1977_s3 + $0x88] sm:$0xff]  ;;  %v1261_v39 = vpack.c.bf16 %v431_v31, %v427_v30  ;;  %v1357_v40 = vpack.c.bf16 %v433_v34, %v429_v32  ;;  %v825_v23 = vld [vmem:[%s1977_s3 + $0xc0] sm:$0xff]  ;;  %v815_v1 = vld [vmem:[%s1977_s3 + $0x70] sm:$0xff] }
  0x80   : > { %752 = vmatprep.mubr.f32.mxu1 %v1592_v52  ;;  %v1359_v41 = vpack.c.bf16 %v818_v36, %v817_v35  ;;  %v1375_v26 = vpack.c.bf16 %v826_v24, %v825_v23  ;;  %v841_v32 = vld [vmem:[%s1977_s3 + $0x140] sm:$0xff]  ;;  %v827_v35 = vld [vmem:[%s1977_s3 + $0xd0] sm:$0xff]  ;;  %v828_v36 = vld [vmem:[%s1977_s3 + $0xd8] sm:$0xff] }
  0x81   : > { %1242 = vmatpush1.bf16.msra.mxu0 %v1241_v42  ;;  %v1391_v42 = vpack.c.bf16 %v850_v38, %v849_v37  ;;  %v859_v37 = vld [vmem:[%s1977_s3 + $0x1d0] sm:$0xff]  ;;  %v1379_v38 = vpack.c.bf16 %v828_v36, %v827_v35 }
  0x82   : > { %1338 = vmatpush1.bf16.msra.mxu1 %v1337_v43  ;;  %1244 = vmatprep.subr.bf16.mxu0 %v1243_v44  ;;  %v801_v43 = vld [vmem:[%s1977_s3] sm:$0xff]  ;;  %v802_v44 = vld [vmem:[%s1977_s3 + $0x8] sm:$0xff] }
  0x83   : > { %1340 = vmatprep.subr.bf16.mxu1 %v1339_v48  ;;  %v820_v48 = vld [vmem:[%s1977_s3 + $0x98] sm:$0xff]  ;;  %v1361_v53 = vpack.c.bf16 %v802_v44, %v801_v43  ;;  %v843_v44 = vld [vmem:[%s1977_s3 + $0x150] sm:$0xff] }
  0x84   : > { %v1413_v46 = vpack.c.bf16 %v844_v45, %v843_v44 }
  0x85   : > { %1246 = vmatpush1.bf16.msra.mxu0 %v1245_v55  ;;  %v1363_v55 = vpack.c.bf16 %v820_v48, %v819_v47  ;;  %v829_v47 = vld [vmem:[%s1977_s3 + $0xe0] sm:$0xff]  ;;  %v830_v48 = vld [vmem:[%s1977_s3 + $0xe8] sm:$0xff] }
  0x86   : > { %1342 = vmatpush1.bf16.msra.mxu1 %v1341_v56  ;;  %1248 = vmatprep.subr.bf16.mxu0 %v1247_v57  ;;  %v803_v56 = vld [vmem:[%s1977_s3 + $0x10] sm:$0xff]  ;;  %v804_v57 = vld [vmem:[%s1977_s3 + $0x18] sm:$0xff]  ;;  %v1383_v50 = vpack.c.bf16 %v830_v48, %v829_v47 }
  0x87   : > { %1344 = vmatprep.subr.bf16.mxu1 %v1343_v61  ;;  %v242_v61 = vld [vmem:[%s1717_s9 + $0xa] sm:$0xff]  ;;  %v1365_v62 = vpack.c.bf16 %v804_v57, %v803_v56  ;;  %v845_v57 = vld [vmem:[%s1977_s3 + $0x160] sm:$0xff] }
  0x89   : > { %1250 = vmatpush1.bf16.msra.mxu0 %v1249_v3  ;;  %v854_v3 = vld [vmem:[%s1977_s3 + $0x1a8] sm:$0xff] }
  0x8a   : > { %1346 = vmatpush1.bf16.msra.mxu1 %v1345_v4  ;;  %1252 = vmatprep.subr.bf16.mxu0 %v1251_v5  ;;  %v805_v4 = vld [vmem:[%s1977_s3 + $0x20] sm:$0xff]  ;;  %v806_v5 = vld [vmem:[%s1977_s3 + $0x28] sm:$0xff] }
  0x8b   : > { %1348 = vmatprep.subr.bf16.mxu1 %v1347_v9  ;;  %v1369_v7 = vpack.c.bf16 %v806_v5, %v805_v4  ;;  %v838_v9 = vld [vmem:[%s1977_s3 + $0x128] sm:$0xff]  ;;  %v847_v4 = vld [vmem:[%s1977_s3 + $0x170] sm:$0xff]  ;;  %v848_v5 = vld [vmem:[%s1977_s3 + $0x178] sm:$0xff] }
  0x8c   : > { %v1401_v10 = vpack.c.bf16 %v838_v9, %v837_v8 }
  0x8d   : > { %1254 = vmatpush1.bf16.msra.mxu0 %v1253_v15  ;;  %v856_v15 = vld [vmem:[%s1977_s3 + $0x1b8] sm:$0xff] }
  0x8e   : > { %1350 = vmatpush1.bf16.msra.mxu1 %v1349_v16  ;;  %1256 = vmatprep.subr.bf16.mxu0 %v1255_v17  ;;  %v807_v16 = vld [vmem:[%s1977_s3 + $0x30] sm:$0xff]  ;;  %v808_v17 = vld [vmem:[%s1977_s3 + $0x38] sm:$0xff]  ;;  %v1403_v18 = vpack.c.bf16 %v856_v15, %v855_v13 }
  0x8f   : > { %1352 = vmatprep.subr.bf16.mxu1 %v1351_v21  ;;  %v1373_v19 = vpack.c.bf16 %v808_v17, %v807_v16  ;;  %v840_v21 = vld [vmem:[%s1977_s3 + $0x138] sm:$0xff] }
  0x90   : > { %v1405_v22 = vpack.c.bf16 %v840_v21, %v839_v20 }
  0x91   : > { %1258 = vmatpush1.bf16.msra.mxu0 %v1257_v27  ;;  %v858_v27 = vld [vmem:[%s1977_s3 + $0x1c8] sm:$0xff] }
  0x92   : > { %1354 = vmatpush1.bf16.msra.mxu1 %v1353_v28  ;;  %1260 = vmatprep.subr.bf16.mxu0 %v1259_v29  ;;  %v809_v28 = vld [vmem:[%s1977_s3 + $0x40] sm:$0xff]  ;;  %v810_v29 = vld [vmem:[%s1977_s3 + $0x48] sm:$0xff]  ;;  %v1407_v30 = vpack.c.bf16 %v858_v27, %v857_v25 }
  0x93   : > { %1356 = vmatprep.subr.bf16.mxu1 %v1355_v33  ;;  %v1377_v31 = vpack.c.bf16 %v810_v29, %v809_v28  ;;  %v842_v33 = vld [vmem:[%s1977_s3 + $0x148] sm:$0xff] }
  0x94   : > { %v1409_v34 = vpack.c.bf16 %v842_v33, %v841_v32 }
  0x95   : > { %1262 = vmatpush1.bf16.msra.mxu0 %v1261_v39  ;;  %v860_v39 = vld [vmem:[%s1977_s3 + $0x1d8] sm:$0xff] }
  0x96   : > { %1358 = vmatpush1.bf16.msra.mxu1 %v1357_v40  ;;  %1360 = vmatprep.subr.bf16.mxu0 %v1359_v41  ;;  %v811_v40 = vld [vmem:[%s1977_s3 + $0x50] sm:$0xff]  ;;  %v812_v41 = vld [vmem:[%s1977_s3 + $0x58] sm:$0xff] }
  0x97   : > { %1392 = vmatprep.subr.bf16.mxu1 %v1391_v42  ;;  %v1411_v42 = vpack.c.bf16 %v860_v39, %v859_v37  ;;  %v1381_v43 = vpack.c.bf16 %v812_v41, %v811_v40 }
  0x98   : > { %599 = vmatmul.mubr.f32.vlgmr.msra.gmra.mrb[0].mxu0 %v241_v49 }
  0x99   : > { %753 = vmatmul.mubr.f32.vlgmr.msra.gmra.mrb[0].mxu1 %v241_v49  ;;  %604 = vmatprep.mubr.f32.mxu0 %v1592_v52  ;;  %v861_v49 = vld [vmem:[%s1977_s3 + $0x1e0] sm:$0xff] }
  0x9a   : > { %758 = vmatprep.mubr.f32.mxu1 %v1592_v52  ;;  %1362 = vmatpush3.bf16.msra.mxu0 %v1361_v53  ;;  %v853_v52 = vld [vmem:[%s1977_s3 + $0x1a0] sm:$0xff] }
  0x9b   : > { %1394 = vmatpush3.bf16.msra.mxu1 %v1393_v54  ;;  %1364 = vmatprep.subr.bf16.mxu0 %v1363_v55  ;;  %v1399_v6 = vpack.c.bf16 %v854_v3, %v853_v52  ;;  %v813_v53 = vld [vmem:[%s1977_s3 + $0x60] sm:$0xff]  ;;  %v814_v54 = vld [vmem:[%s1977_s3 + $0x68] sm:$0xff]  ;;  %v1415_v55 = vpack.c.bf16 %v862_v51, %v861_v49  ;;  %v816_v52 = vld [vmem:[%s1977_s3 + $0x78] sm:$0xff] }
  0x9c   : > { %605 = vmatmul.mubr.f32.gmra.mrb[2].mxu0 %v242_v61  ;;  %1396 = vmatprep.subr.bf16.mxu1 %v1395_v58  ;;  %v1385_v56 = vpack.c.bf16 %v814_v54, %v813_v53  ;;  %v846_v58 = vld [vmem:[%s1977_s3 + $0x168] sm:$0xff]  ;;  %v1389_v3 = vpack.c.bf16 %v816_v52, %v815_v1 }
  0x9d   : > { %759 = vmatmul.mubr.f32.gmra.mrb[2].mxu1 %v242_v61  ;;  %v1417_v59 = vpack.c.bf16 %v846_v58, %v845_v57  ;;  %v832_v61 = vld [vmem:[%s1977_s3 + $0xf8] sm:$0xff] }
  0x9e   : > { %1366 = vmatpush3.bf16.msra.mxu0 %v1365_v62  ;;  %v863_v62 = vld [vmem:[%s1977_s3 + $0x1f0] sm:$0xff] }
  0x9f   : > { %1398 = vmatpush3.bf16.msra.mxu1 %v1397_v63  ;;  %1368 = vmatprep.subr.bf16.mxu0 %v1367_v2  ;;  %v1387_v63 = vpack.c.bf16 %v832_v61, %v831_v60  ;;  %v1419_v2 = vpack.c.bf16 %v864_v0, %v863_v62 }
  0xa0   : > { %1400 = vmatprep.subr.bf16.mxu1 %v1399_v6  ;;  %v1421_v6 = vpack.c.bf16 %v848_v5, %v847_v4 }
  0xa2   : > { %1370 = vmatpush3.bf16.msra.mxu0 %v1369_v7  ;;  %v437_v7 = vlaneseq }
  0xa3   : > { %1402 = vmatpush3.bf16.msra.mxu1 %v1401_v10  ;;  %1372 = vmatprep.subr.bf16.mxu0 %v1371_v14  ;;  %v435_v10 = vld [vmem:[%s1976_s2] sm:$0xf] }
  0xa4   : > { %1404 = vmatprep.subr.bf16.mxu1 %v1403_v18  ;;  %v438_v8 = vshrl.u32 %v437_v7, 7 }
  0xa6   : > { %1374 = vmatpush3.bf16.msra.mxu0 %v1373_v19  ;;  %v439_v9 = vsub.s32 0, %v438_v8  ;;  %v447_v11 = vsub.s32 2, %v438_v8  ;;  %v443_v12 = vsub.s32 1, %v438_v8  ;;  %v451_v13 = vsub.s32 3, %v438_v8  ;;  %v865_v8 = vld [vmem:[%s1978_s4] sm:$0x1] }
  0xa7   : > { %1406 = vmatpush3.bf16.msra.mxu1 %v1405_v22  ;;  %1376 = vmatprep.subr.bf16.mxu0 %v1375_v26 }
  0xa8   : > { %1408 = vmatprep.subr.bf16.mxu1 %v1407_v30  ;;  %v440_v14 = vrot.slane %v435_v10, %v439_v9  ;;  %v448_v16 = vrot.slane %v435_v10, %v447_v11  ;;  %v444_v17 = vrot.slane %v435_v10, %v443_v12  ;;  %v452_v20 = vrot.slane %v435_v10, %v451_v13 }
  0xaa   : > { %1378 = vmatpush3.bf16.msra.mxu0 %v1377_v31 }
  0xab   : > { %1410 = vmatpush3.bf16.msra.mxu1 %v1409_v34  ;;  %1380 = vmatprep.subr.bf16.mxu0 %v1379_v38 }
  0xac   : > { %1412 = vmatprep.subr.bf16.mxu1 %v1411_v42 }
  0xae   : > { %1382 = vmatpush3.bf16.msra.mxu0 %v1381_v43 }
  0xaf   : > { %1414 = vmatpush3.bf16.msra.mxu1 %v1413_v46  ;;  %1384 = vmatprep.subr.bf16.mxu0 %v1383_v50 }
  0xb0   : > { %1416 = vmatprep.subr.bf16.mxu1 %v1415_v55 }
  0xb2   : > { %1386 = vmatpush3.bf16.msra.mxu0 %v1385_v56 }
  0xb3   : > { %1418 = vmatpush3.bf16.msra.mxu1 %v1417_v59  ;;  %1388 = vmatprep.subr.bf16.mxu0 %v1387_v63 }
  0xb4   : > { %1420 = vmatprep.subr.bf16.mxu1 %v1419_v2 }
  0xb6   : > { %1390 = vmatpush3.bf16.msra.mxu0 %v1389_v3 }
  0xb7   : > { %1422 = vmatpush3.bf16.msra.mxu1 %v1421_v6 }
 0x16b   : > { %v600_v15 = vpop.f32.mrb[0].mxu0 }
 0x16c   : > { %v754_v18 = vpop.f32.mrb[0].mxu1  ;;  %v602_v19 = vpop.f32.mrb[1].mxu0  ;;  %v1423_v22 = vadd.f32 %v600_v15, %v440_v14 }
 0x16d   : > { %v756_v21 = vpop.f32.mrb[1].mxu1  ;;  %v1427_v23 = vadd.f32 %v754_v18, %v448_v16  ;;  %v1424_v24 = vadd.f32 %v602_v19, %v444_v17 }
 0x16e   : > { %v1428_v26 = vadd.f32 %v756_v21, %v452_v20  ;;  %v765_v33 = vmax.f32 %v1423_v22, 0.0 }
 0x16f   : > { %v606_v25 = vpop.f32.mrb[2].mxu0  ;;  %v767_v36 = vmax.f32 %v1427_v23, 0.0  ;;  %v766_v37 = vmax.f32 %v1424_v24, 0.0 }
 0x170   : > { %v1425_v27 = vadd.f32 %v606_v25, %v440_v14  ;;  %v760_v28 = vpop.f32.mrb[2].mxu1  ;;  %v608_v29 = vpop.f32.mrb[3].mxu0  ;;  %v768_v40 = vmax.f32 %v1428_v26, 0.0 }
 0x171   : > { %v1429_v30 = vadd.f32 %v760_v28, %v448_v16  ;;  %v1426_v31 = vadd.f32 %v608_v29, %v444_v17  ;;  %v762_v32 = vpop.f32.mrb[3].mxu1 }
 0x172   : > { %v769_v34 = vmax.f32 %v1425_v27, 0.0  ;;  %v1430_v35 = vadd.f32 %v762_v32, %v452_v20 }
 0x173   : > { %v771_v38 = vmax.f32 %v1429_v30, 0.0  ;;  %v770_v39 = vmax.f32 %v1426_v31, 0.0 }
 0x174   : > { %v773_v41 = vadd.f32 %v769_v34, %v765_v33  ;;  %v772_v42 = vmax.f32 %v1430_v35, 0.0 }
 0x175   : > { %v787_v43 = vadd.f32 %v771_v38, %v767_v36  ;;  %v780_v44 = vadd.f32 %v770_v39, %v766_v37 }
 0x176   : > { %v774_v45 = vrot.slane %v773_v41, 4  ;;  %v794_v46 = vadd.f32 %v772_v42, %v768_v40 }
 0x177   : > { %v788_v47 = vrot.slane %v787_v43, 4  ;;  %v781_v48 = vrot.slane %v780_v44, 4 }
 0x178   : > { %v775_v49 = vadd.f32 %v774_v45, %v773_v41  ;;  %v795_v50 = vrot.slane %v794_v46, 4 }
 0x179   : > { %v789_v51 = vadd.f32 %v788_v47, %v787_v43  ;;  %v782_v53 = vadd.f32 %v781_v48, %v780_v44 }
 0x17a   : > { %v776_v54 = vrot.slane %v775_v49, 2  ;;  %v796_v55 = vadd.f32 %v795_v50, %v794_v46 }
 0x17b   : > { %v790_v56 = vrot.slane %v789_v51, 2  ;;  %v783_v57 = vrot.slane %v782_v53, 2 }
 0x17c   : > { %v777_v58 = vadd.f32 %v776_v54, %v775_v49  ;;  %v797_v59 = vrot.slane %v796_v55, 2 }
 0x17d   : > { %v791_v60 = vadd.f32 %v790_v56, %v789_v51  ;;  %v784_v61 = vadd.f32 %v783_v57, %v782_v53 }
 0x17e   : > { %v778_v62 = vrot.slane %v777_v58, 1  ;;  %v798_v63 = vadd.f32 %v797_v59, %v796_v55 }
 0x17f   : > { %v792_v0 = vrot.slane %v791_v60, 1  ;;  %v785_v1 = vrot.slane %v784_v61, 1 }
 0x180   : > { %v799_v52 = vrot.slane %v798_v63, 1  ;;  %v779_v3 = vadd.f32 %v778_v62, %v777_v58 }
 0x181   : > { %v786_v2 = vadd.f32 %v785_v1, %v784_v61  ;;  %v793_v5 = vadd.f32 %v792_v0, %v791_v60 }
 0x182   : > { %v800_v4 = vadd.f32 %v799_v52, %v798_v63 }
 0x183   : > { %930 = vmatprep.mubr.f32.mxu0 %v786_v2 }
 0x184   : > { %1000 = vmatprep.mubr.f32.mxu1 %v800_v4  ;;  %931 = vmatmul.mubr.f32.vlgmr.msra.gmra.mrb[4].mxu0 %v779_v3 }
 0x185   : > { %1001 = vmatmul.mubr.f32.vlgmr.msra.gmra.mrb[4].mxu1 %v793_v5 }
 0x257   : > { %v1129_v6 = vpop.f32.mrb[4].mxu0 }
 0x258   : > { %v1164_v7 = vpop.f32.mrb[4].mxu1  ;;  %v1130_v9 = vpop.f32.mrb[5].mxu0 }
 0x259   : > { %v1131_v10 = vadd.f32 %v1130_v9, %v1129_v6  ;;  %v1165_v11 = vpop.f32.mrb[5].mxu1 }
 0x25a   : > { %v1166_v12 = vadd.f32 %v1165_v11, %v1164_v7 }
 0x25b   : > { %v933_v13 = vadd.f32 %v1131_v10, %v865_v8 }
 0x25d   : > { %v1003_v14 = vadd.f32 %v1166_v12, %v933_v13 }
 0x25f   : > { %1006 = vst [vmem:[%s231_s17] sm:$0x1] %v1003_v14 }
 0x260   : > { %1534 = shalt.err (!%p1531_p7)
}
 0x261   : > { %s1535_s11 = scalar_lea.hbm %s1932_s30, 16  ;;  %s1539_s14 = scalar_lea.hbm %s1979_s5, 32 }
 0x262   : > { %p1536_p8 = scmp.ne.s32.totalorder %s1932_s30, %s1535_s11  ;;  %p1540_p1 = scmp.lt.u32.totalorder %s1932_s30, %s1979_s5 }
 0x263   : > { %p1541_p0 = scmp.lt.u32.totalorder %s1539_s14, %s1535_s11  ;;  %p1543_p6 = scmp.lt.u32.totalorder %s1535_s11, %s1932_s30 }
 0x264   : > { %p1537_p11 = pnand %p1536_p8, %p1990_p9 }
 0x265   : > { %p1542_p5 = por %p1541_p0, %p1540_p1 }
 0x266   : > { %p1538_p13 = pneg %p1537_p11 }
 0x267   : > { %p1544_p10 = por %p1543_p6, %p1542_p5 }
 0x269   : > { %p1545_p12 = pnand %p1544_p10, %p1538_p13 }
 0x26b   : > { %1548 = shalt.err (!%p1545_p12)
}
 0x26c   : > { %1444 = dma.vmem_to_hbm [thread:$0]  (%p1990_p9), %s1934_s23, 16, %s1932_s30, %s1008_s6  }
 0x26d PF: > { %p1456_p2 = scmp.ge.s32.totalorder %s1587_s21, 2  ;;  %s1032_s16 = sand.u32 1, %s1575_s18  }
 0x26e   : > { %p1991_p3 = scmp.ne.s32.totalorder %s1984_s29, 0  ;;  %s1033_s17 = scalar_lea.sflag [#allocation4], %s1032_s16 }
 0x270   : > { %p1451_p4 = pnand %p1456_p2, %p1991_p3 }
 0x272   : > { %1570 = dma.done.wait (!%p1451_p4), %s1033_s17, 16  }
 0x273   : > { %1572 = vsyncadd (!%p1451_p4), %s1033_s17, 4294967280  ;;  %p16_p7 = scmp.ge.s32.totalorder %s1649_s24, 4   ;;  %s1992_s18 = smov %s1579_s19 }
 0x274   : > { %s1993_s19 = smov %s1583_s20  ;;  %s1994_s20 = smov %s1660_s27 }
 0x275   : > { %s1995_s21 = smov %s1649_s24  ;;  %18 = sbr.rel (!%p16_p7) target bundleno = 4 (0x4), region = 80 }
 0x27c   :  { %1037 = vsyncpa [#allocation3], 1 }
 0x27d   :  { %1039 = vsyncpa [#allocation3 + $0x1], 1 }
 0x27e   :  { %1040 = vsyncpa [#allocation4], 1 }
 0x27f   :  { %1042 = vsyncpa [#allocation4 + $0x1], 1 }

</bundles_post_ra>
